<compile_context>
chip_gen: v6e
topology: v6e:2x2x1
jax: 0.10.0
libtpu: 0.0.40
codegen_flags: <defaults>
</compile_context>

<pallas_src>
import math

import jax
import jax.numpy as jnp
from jax.experimental import pallas as pl
from jax.experimental.pallas import tpu as pltpu


def _lstm_seq_kernel(xg_ref, wh_ref, pmul_ref, padd_ref, h0_ref, c0_ref,
                     h_seq_ref, c_out_ref, h_sc, c_sc):
    t = pl.program_id(0)

    # Load carried state into VMEM scratch at the first step.
    @pl.when(t == 0)
    def _():
        h_sc[...] = h0_ref[...]
        c_sc[...] = c0_ref[...]

    h = h_sc[...]
    c = c_sc[...]
    H = h.shape[1]

    # Recurrent projection only (K = H); the input projection + fused bias were
    # folded into xg outside the kernel as one big matmul.
    z = xg_ref[0] + jnp.dot(h, wh_ref[...], preferred_element_type=jnp.float32)

    # One EUP pass for all four gates: sigmoid lanes were pre-scaled by 0.5 in
    # the parameters, so sigmoid(z) = 0.5*tanh(z/2) + 0.5 and tanh(z) are both
    # recovered from a single tanh followed by a per-lane FMA.
    act = jnp.tanh(z) * pmul_ref[...] + padd_ref[...]

    # Gate order along lanes: [ forget | input | cell | out ].
    f = act[:, 0 * H:1 * H]
    i = act[:, 1 * H:2 * H]
    g = act[:, 2 * H:3 * H]
    o = act[:, 3 * H:4 * H]

    c_new = f * c + i * g
    h_new = o * jnp.tanh(c_new)

    # Carry state, emit this step's hidden state.
    h_sc[...] = h_new
    c_sc[...] = c_new
    h_seq_ref[0] = h_new

    @pl.when(t == pl.num_programs(0) - 1)
    def _():
        c_out_ref[...] = c_new


def prepare_lstm_params(wx, wh, bx, bh):
    """One-time parameter prep (hoisted out of every step).

    wx: [4H, I], wh: [4H, H], bx/bh: [4H]  (gate order f, i, g, o).
    Returns (wx_s [I,4H], wh_s [H,4H], b_s [1,4H], post_mul [1,4H],
    post_add [1,4H]) where the sigmoid-lane 0.5 pre-scale is folded into the
    weights and the fused bias.
    """
    four_h = wx.shape[0]
    H = four_h // 4
    lane = jnp.arange(four_h)
    is_cell = (lane >= 2 * H) & (lane < 3 * H)                     # tanh lanes
    pre = jnp.where(is_cell, 1.0, 0.5).astype(jnp.float32)         # arg scale
    post_mul = pre.reshape(1, four_h)
    post_add = jnp.where(is_cell, 0.0, 0.5).astype(jnp.float32).reshape(1, four_h)
    wx_s = wx.T * pre                                              # [I, 4H]
    wh_s = wh.T * pre                                              # [H, 4H]
    b_s = ((bx + bh) * pre).reshape(1, four_h)                     # [1, 4H]
    return wx_s, wh_s, b_s, post_mul, post_add


def lstm_sequence(x_seq, h0, c0, params):
    """Run the LSTMCell over a whole sequence in ONE pallas_call.

    x_seq: [T, B, I]; h0, c0: [B, H].
    Returns (h_seq [T, B, H], c_last [B, H]).
    """
    wx_s, wh_s, b_s, post_mul, post_add = params
    T, B, I = x_seq.shape
    H = h0.shape[1]
    four_h = 4 * H

    # Input projection for ALL timesteps as one large, MXU-filling matmul
    # (M = T*B), with the fused+pre-scaled bias added here once.
    xg = (x_seq.reshape(T * B, I) @ wx_s + b_s).reshape(T, B, four_h)

    h_seq, c_last = pl.pallas_call(
        _lstm_seq_kernel,
        grid=(T,),
        in_specs=[
            pl.BlockSpec((1, B, four_h), lambda t: (t, 0, 0)),  # xg_t (pipelined)
            pl.BlockSpec((H, four_h), lambda t: (0, 0)),        # Wh^T   (resident)
            pl.BlockSpec((1, four_h), lambda t: (0, 0)),        # post_mul (resident)
            pl.BlockSpec((1, four_h), lambda t: (0, 0)),        # post_add (resident)
            pl.BlockSpec((B, H), lambda t: (0, 0)),             # h0     (resident)
            pl.BlockSpec((B, H), lambda t: (0, 0)),             # c0     (resident)
        ],
        out_specs=[
            pl.BlockSpec((1, B, H), lambda t: (t, 0, 0)),       # h_t per step
            pl.BlockSpec((B, H), lambda t: (0, 0)),             # c_T (last step)
        ],
        out_shape=(
            jax.ShapeDtypeStruct((T, B, H), jnp.float32),
            jax.ShapeDtypeStruct((B, H), jnp.float32),
        ),
        scratch_shapes=[
            pltpu.VMEM((B, H), jnp.float32),   # carried h
            pltpu.VMEM((B, H), jnp.float32),   # carried c
        ],
        compiler_params=pltpu.CompilerParams(
            dimension_semantics=("arbitrary",)),  # time axis is sequential
    )(xg, wh_s, post_mul, post_add, h0, c0)
    return h_seq, c_last


def lstm_cell(x, hx, cx, params):
    """Single-step forward matching the PyTorch module: returns (h_new, c_new)."""
    h_seq, c_last = lstm_sequence(x[None], hx, cx, params)
    return h_seq[0], c_last


def _reference_cell(x, hx, cx, wx, wh, bx, bh):
    """Pure-JAX mirror of the PyTorch forward (for the correctness check)."""
    H = hx.shape[1]
    gates = x @ wx.T + bx + hx @ wh.T + bh
    f = jax.nn.sigmoid(gates[:, 0 * H:1 * H])
    i = jax.nn.sigmoid(gates[:, 1 * H:2 * H])
    g = jnp.tanh(gates[:, 2 * H:3 * H])
    o = jax.nn.sigmoid(gates[:, 3 * H:4 * H])
    c_new = f * cx + i * g
    h_new = o * jnp.tanh(c_new)
    return h_new, c_new


if __name__ == "__main__":
    B, INPUT_SIZE, HIDDEN, T = 8, 16, 32, 16   # 4H = 128 -> gates are one lane width

    key = jax.random.PRNGKey(0)
    k_x, k_h, k_c, k_wx, k_wh, k_bx, k_bh = jax.random.split(key, 7)

    # Parameters: uniform(-std, std), std = 1/sqrt(hidden_size), mirroring
    # LSTMCell.reset_parameters().  (self.c2c is unused in forward -> skipped.)
    std = 1.0 / math.sqrt(HIDDEN)
    wx = jax.random.uniform(k_wx, (4 * HIDDEN, INPUT_SIZE), jnp.float32, -std, std)
    wh = jax.random.uniform(k_wh, (4 * HIDDEN, HIDDEN), jnp.float32, -std, std)
    bx = jax.random.uniform(k_bx, (4 * HIDDEN,), jnp.float32, -std, std)
    bh = jax.random.uniform(k_bh, (4 * HIDDEN,), jnp.float32, -std, std)

    # Inputs / hidden state (a T-step sequence; step 0 doubles as the
    # single-cell check matching the module's forward).
    x_seq = jax.random.normal(k_x, (T, B, INPUT_SIZE), jnp.float32)
    hx = jax.random.normal(k_h, (B, HIDDEN), jnp.float32)
    cx = jax.random.normal(k_c, (B, HIDDEN), jnp.float32)

    params = prepare_lstm_params(wx, wh, bx, bh)

    # --- single-step (the module's forward) -------------------------------
    h1, c1 = lstm_cell(x_seq[0], hx, cx, params)
    jax.block_until_ready((h1, c1))
    h1_ref, c1_ref = _reference_cell(x_seq[0], hx, cx, wx, wh, bx, bh)
    assert h1.shape == (B, HIDDEN) and c1.shape == (B, HIDDEN)
    assert jnp.allclose(h1, h1_ref, atol=1e-4, rtol=1e-4), "single-step h mismatch"
    assert jnp.allclose(c1, c1_ref, atol=1e-4, rtol=1e-4), "single-step c mismatch"

    # --- time-fused sequence (the performance path) ------------------------
    h_seq, c_last = lstm_sequence(x_seq, hx, cx, params)
    jax.block_until_ready((h_seq, c_last))

    h_ref, c_ref = hx, cx
    h_refs = []
    for t in range(T):
        h_ref, c_ref = _reference_cell(x_seq[t], h_ref, c_ref, wx, wh, bx, bh)
        h_refs.append(h_ref)
    h_ref_seq = jnp.stack(h_refs, axis=0)

    assert h_seq.shape == (T, B, HIDDEN) and c_last.shape == (B, HIDDEN)
    assert jnp.allclose(h_seq, h_ref_seq, atol=1e-4, rtol=1e-4), "sequence h mismatch"
    assert jnp.allclose(c_last, c_ref, atol=1e-4, rtol=1e-4), "sequence c mismatch"

    print("KERNEL_OK")
</pallas_src>

<mosaic_0001>
module attributes {stable_mosaic.version = 11 : i64} {
  func.func @_lstm_seq_kernel(%arg0: i32, %arg1: memref<1x8x128xf32, #tpu.memory_space<vmem>>, %arg2: memref<32x128xf32, #tpu.memory_space<vmem>>, %arg3: memref<1x128xf32, #tpu.memory_space<vmem>>, %arg4: memref<1x128xf32, #tpu.memory_space<vmem>>, %arg5: memref<8x32xf32, #tpu.memory_space<vmem>>, %arg6: memref<8x32xf32, #tpu.memory_space<vmem>>, %arg7: memref<1x8x32xf32, #tpu.memory_space<vmem>>, %arg8: memref<8x32xf32, #tpu.memory_space<vmem>>, %arg9: memref<8x32xf32, #tpu.memory_space<vmem>>, %arg10: memref<8x32xf32, #tpu.memory_space<vmem>>) attributes {dimension_semantics = [#tpu.dimension_semantics<arbitrary>], iteration_bounds = array<i64: 1>, scalar_prefetch = 0 : i64, scratch_operands = 2 : i64, tpu.core_type = #tpu.core_type<tc>, window_params = [{transform_indices = @transform_0, window_bounds = array<i64: 1, 8, 128>}, {pipeline_mode = #tpu.pipeline_mode<synchronous>, transform_indices = @transform_1, window_bounds = array<i64: 32, 128>}, {pipeline_mode = #tpu.pipeline_mode<synchronous>, transform_indices = @transform_2, window_bounds = array<i64: 1, 128>}, {pipeline_mode = #tpu.pipeline_mode<synchronous>, transform_indices = @transform_3, window_bounds = array<i64: 1, 128>}, {pipeline_mode = #tpu.pipeline_mode<synchronous>, transform_indices = @transform_4, window_bounds = array<i64: 8, 32>}, {pipeline_mode = #tpu.pipeline_mode<synchronous>, transform_indices = @transform_5, window_bounds = array<i64: 8, 32>}, {transform_indices = @transform_6, window_bounds = array<i64: 1, 8, 32>}, {pipeline_mode = #tpu.pipeline_mode<synchronous>, transform_indices = @transform_7, window_bounds = array<i64: 8, 32>}]} {
    %c0_i32 = arith.constant 0 : i32
    %0 = arith.cmpi eq, %arg0, %c0_i32 : i32
    %1 = arith.extui %0 : i1 to i32
    %c0_i32_0 = arith.constant 0 : i32
    %2 = arith.cmpi ne, %1, %c0_i32_0 : i32
    scf.if %2 {
      %c0_22 = arith.constant 0 : index
      %c0_23 = arith.constant 0 : index
      %34 = vector.load %arg5[%c0_22, %c0_23] : memref<8x32xf32, #tpu.memory_space<vmem>>, vector<8x32xf32>
      %c0_24 = arith.constant 0 : index
      %c0_25 = arith.constant 0 : index
      %35 = vector.load %arg9[%c0_24, %c0_25] : memref<8x32xf32, #tpu.memory_space<vmem>>, vector<8x32xf32>
      tpu.vector_store %arg9[%c0_24, %c0_25], %34 {strides = array<i32>} : memref<8x32xf32, #tpu.memory_space<vmem>>, vector<8x32xf32>,
      %c0_26 = arith.constant 0 : index
      %c0_27 = arith.constant 0 : index
      %36 = vector.load %arg6[%c0_26, %c0_27] : memref<8x32xf32, #tpu.memory_space<vmem>>, vector<8x32xf32>
      %c0_28 = arith.constant 0 : index
      %c0_29 = arith.constant 0 : index
      %37 = vector.load %arg10[%c0_28, %c0_29] : memref<8x32xf32, #tpu.memory_space<vmem>>, vector<8x32xf32>
      tpu.vector_store %arg10[%c0_28, %c0_29], %36 {strides = array<i32>} : memref<8x32xf32, #tpu.memory_space<vmem>>, vector<8x32xf32>,
    } else {
    }
    %c0 = arith.constant 0 : index
    %c0_1 = arith.constant 0 : index
    %3 = vector.load %arg9[%c0, %c0_1] : memref<8x32xf32, #tpu.memory_space<vmem>>, vector<8x32xf32>
    %c0_2 = arith.constant 0 : index
    %c0_3 = arith.constant 0 : index
    %4 = vector.load %arg10[%c0_2, %c0_3] : memref<8x32xf32, #tpu.memory_space<vmem>>, vector<8x32xf32>
    %c0_4 = arith.constant 0 : index
    %c0_5 = arith.constant 0 : index
    %c0_6 = arith.constant 0 : index
    %5 = vector.load %arg1[%c0_4, %c0_5, %c0_6] : memref<1x8x128xf32, #tpu.memory_space<vmem>>, vector<1x8x128xf32>
    %6 = vector.shape_cast %5 : vector<1x8x128xf32> to vector<8x128xf32>
    %c0_7 = arith.constant 0 : index
    %c0_8 = arith.constant 0 : index
    %7 = vector.load %arg2[%c0_7, %c0_8] : memref<32x128xf32, #tpu.memory_space<vmem>>, vector<32x128xf32>
    %cst = arith.constant dense<0.000000e+00> : vector<8x128xf32>
    %8 = tpu.matmul %3, %7, %cst {dimension_numbers = #tpu.dot_dimension_numbers<[1], [0], [0], [1], [0, 0, 1, 1], [], []>} : vector<8x32xf32>, vector<32x128xf32>, vector<8x128xf32> -> vector<8x128xf32>
    %9 = arith.addf %6, %8 : vector<8x128xf32>
    %10 = math.tanh %9 : vector<8x128xf32>
    %c0_9 = arith.constant 0 : index
    %c0_10 = arith.constant 0 : index
    %11 = vector.load %arg3[%c0_9, %c0_10] : memref<1x128xf32, #tpu.memory_space<vmem>>, vector<1x128xf32>
    %12 = vector.broadcast %11 : vector<1x128xf32> to vector<8x128xf32>
    %13 = arith.mulf %10, %12 : vector<8x128xf32>
    %c0_11 = arith.constant 0 : index
    %c0_12 = arith.constant 0 : index
    %14 = vector.load %arg4[%c0_11, %c0_12] : memref<1x128xf32, #tpu.memory_space<vmem>>, vector<1x128xf32>
    %15 = vector.broadcast %14 : vector<1x128xf32> to vector<8x128xf32>
    %16 = arith.addf %13, %15 : vector<8x128xf32>
    %17 = vector.extract_strided_slice %16 {offsets = [0, 0], sizes = [8, 32], strides = [1, 1]} : vector<8x128xf32> to vector<8x32xf32>
    %18 = vector.extract_strided_slice %16 {offsets = [0, 32], sizes = [8, 32], strides = [1, 1]} : vector<8x128xf32> to vector<8x32xf32>
    %19 = vector.extract_strided_slice %16 {offsets = [0, 64], sizes = [8, 32], strides = [1, 1]} : vector<8x128xf32> to vector<8x32xf32>
    %20 = vector.extract_strided_slice %16 {offsets = [0, 96], sizes = [8, 32], strides = [1, 1]} : vector<8x128xf32> to vector<8x32xf32>
    %21 = arith.mulf %17, %4 : vector<8x32xf32>
    %22 = arith.mulf %18, %19 : vector<8x32xf32>
    %23 = arith.addf %21, %22 : vector<8x32xf32>
    %24 = math.tanh %23 : vector<8x32xf32>
    %25 = arith.mulf %20, %24 : vector<8x32xf32>
    %c0_13 = arith.constant 0 : index
    %c0_14 = arith.constant 0 : index
    %26 = vector.load %arg9[%c0_13, %c0_14] : memref<8x32xf32, #tpu.memory_space<vmem>>, vector<8x32xf32>
    tpu.vector_store %arg9[%c0_13, %c0_14], %25 {strides = array<i32>} : memref<8x32xf32, #tpu.memory_space<vmem>>, vector<8x32xf32>,
    %c0_15 = arith.constant 0 : index
    %c0_16 = arith.constant 0 : index
    %27 = vector.load %arg10[%c0_15, %c0_16] : memref<8x32xf32, #tpu.memory_space<vmem>>, vector<8x32xf32>
    tpu.vector_store %arg10[%c0_15, %c0_16], %23 {strides = array<i32>} : memref<8x32xf32, #tpu.memory_space<vmem>>, vector<8x32xf32>,
    %c0_17 = arith.constant 0 : index
    %c0_18 = arith.constant 0 : index
    %c0_19 = arith.constant 0 : index
    %28 = vector.load %arg7[%c0_17, %c0_18, %c0_19] : memref<1x8x32xf32, #tpu.memory_space<vmem>>, vector<1x8x32xf32>
    %29 = vector.shape_cast %28 : vector<1x8x32xf32> to vector<8x32xf32>
    %30 = vector.shape_cast %25 : vector<8x32xf32> to vector<1x8x32xf32>
    tpu.vector_store %arg7[%c0_17, %c0_18, %c0_19], %30 {strides = array<i32>} : memref<1x8x32xf32, #tpu.memory_space<vmem>>, vector<1x8x32xf32>,
    %c0_i32_20 = arith.constant 0 : i32
    %31 = arith.cmpi eq, %arg0, %c0_i32_20 : i32
    %32 = arith.extui %31 : i1 to i32
    %c0_i32_21 = arith.constant 0 : i32
    %33 = arith.cmpi ne, %32, %c0_i32_21 : i32
    scf.if %33 {
      %c0_22 = arith.constant 0 : index
      %c0_23 = arith.constant 0 : index
      %34 = vector.load %arg8[%c0_22, %c0_23] : memref<8x32xf32, #tpu.memory_space<vmem>>, vector<8x32xf32>
      tpu.vector_store %arg8[%c0_22, %c0_23], %23 {strides = array<i32>} : memref<8x32xf32, #tpu.memory_space<vmem>>, vector<8x32xf32>,
    } else {
    }
    return
  }
  func.func @transform_0(%arg0: i32) -> (i32, i32, i32) {
    %c0_i32 = arith.constant 0 : i32
    %c0_i32_0 = arith.constant 0 : i32
    %c0_i32_1 = arith.constant 0 : i32
    return %arg0, %c0_i32, %c0_i32_0 : i32, i32, i32
  }
  func.func @transform_1(%arg0: i32) -> (i32, i32) {
    %c0_i32 = arith.constant 0 : i32
    %c0_i32_0 = arith.constant 0 : i32
    %c0_i32_1 = arith.constant 0 : i32
    return %c0_i32, %c0_i32_0 : i32, i32
  }
  func.func @transform_2(%arg0: i32) -> (i32, i32) {
    %c0_i32 = arith.constant 0 : i32
    %c0_i32_0 = arith.constant 0 : i32
    %c0_i32_1 = arith.constant 0 : i32
    return %c0_i32, %c0_i32_0 : i32, i32
  }
  func.func @transform_3(%arg0: i32) -> (i32, i32) {
    %c0_i32 = arith.constant 0 : i32
    %c0_i32_0 = arith.constant 0 : i32
    %c0_i32_1 = arith.constant 0 : i32
    return %c0_i32, %c0_i32_0 : i32, i32
  }
  func.func @transform_4(%arg0: i32) -> (i32, i32) {
    %c0_i32 = arith.constant 0 : i32
    %c0_i32_0 = arith.constant 0 : i32
    %c0_i32_1 = arith.constant 0 : i32
    return %c0_i32, %c0_i32_0 : i32, i32
  }
  func.func @transform_5(%arg0: i32) -> (i32, i32) {
    %c0_i32 = arith.constant 0 : i32
    %c0_i32_0 = arith.constant 0 : i32
    %c0_i32_1 = arith.constant 0 : i32
    return %c0_i32, %c0_i32_0 : i32, i32
  }
  func.func @transform_6(%arg0: i32) -> (i32, i32, i32) {
    %c0_i32 = arith.constant 0 : i32
    %c0_i32_0 = arith.constant 0 : i32
    %c0_i32_1 = arith.constant 0 : i32
    return %arg0, %c0_i32, %c0_i32_0 : i32, i32, i32
  }
  func.func @transform_7(%arg0: i32) -> (i32, i32) {
    %c0_i32 = arith.constant 0 : i32
    %c0_i32_0 = arith.constant 0 : i32
    %c0_i32_1 = arith.constant 0 : i32
    return %c0_i32, %c0_i32_0 : i32, i32
  }
}

</mosaic_0001>

<bundles_post_ra>
// kernel: tpu_custom_call.1
= control target key start
LH: loop header
LB: loop body
LE: loop exit
PB: predicated region body
PF: predicated region fallthrough
CT: control target
= control target key end

     0   :  { %13 = vsyncpa [#allocation5], 0  ;;  %s491_s0 = inlined_call_operand.hbm [shape: f32[1,8,128], index: 0, kind: input, shape index: {}]   ;;  %s492_s1 = inlined_call_operand.hbm [shape: f32[32,128], index: 1, kind: input, shape index: {}]   ;;  %s493_s2 = inlined_call_operand.vmem [shape: f32[1,128], index: 2, kind: input, shape index: {}]   ;;  %s494_s3 = inlined_call_operand.hbm [shape: f32[1,128], index: 3, kind: input, shape index: {}]   ;;  %s495_s4 = inlined_call_operand.hbm [shape: f32[8,32], index: 4, kind: input, shape index: {}]   ;;  %s496_s5 = inlined_call_operand.vmem [shape: f32[8,32], index: 5, kind: input, shape index: {}]   ;;  %s497_s6 = inlined_call_operand.hbm [shape: f32[1,8,32], index: 6, kind: output, shape index: {0}]   ;;  %s498_s7 = inlined_call_operand.hbm [shape: f32[8,32], index: 7, kind: output, shape index: {1}]  }
   0x1   :  { %14 = vsyncpa [#allocation8], 0 }
   0x2   :  { %15 = vsyncpa [#allocation11], 0 }
   0x3   :  { %16 = vsyncpa [#allocation6], 0 }
   0x4   :  { %17 = vsyncpa [#allocation14], 0  ;;  %s408_s24 = smov [#allocation7]  }
   0x5   :  { %s33_s25 = sshll.u32 %s408_s24, 4  ;;  %s34_s25 = int_to_ptr.vmem [resolvable:$true] %s33_s25 }
   0x6   :  { %s286_s26 = scalar_lea.vmem %s34_s25, 512  ;;  %p291_p1 = scmp.lt.s32.totalorder %s34_s25, %s34_s25 }
   0x7   :  { %p287_p0 = scmp.ne.s32.totalorder %s34_s25, %s286_s26  ;;  %p292_p2 = scmp.lt.s32.totalorder %s286_s26, %s286_s26 }
   0x9   :  { %p293_p3 = por %p292_p2, %p291_p1 }
   0xb   :  { %p294_p4 = pnand %p293_p3, %p287_p0 }
   0xd   :  { %297 = shalt.err (!%p294_p4)
}
   0xe   :  { %s409_s27 = smov 128   ;;  %s410_s28 = smov 8  }
   0xf   :  { %39 = dma.hbm_to_vmem [thread:$0]  %s492_s1, 512, %s34_s25, [#allocation8], %s409_s27, %s409_s27, %s410_s28  }
  0x10   :  { %s411_s8 = smov [#allocation4]   ;;  %s412_s10 = smov [#allocation9]  }
  0x11   :  { %s24_s9 = sshll.u32 %s411_s8, 4  ;;  %s48_s11 = sshll.u32 %s412_s10, 4  ;;  %s25_s9 = int_to_ptr.vmem [resolvable:$true] %s24_s9  ;;  %s49_s11 = int_to_ptr.vmem [resolvable:$true] %s48_s11 }
  0x12   :  { %s306_s12 = scalar_lea.vmem %s25_s9, 128  ;;  %p311_p6 = scmp.lt.s32.totalorder %s25_s9, %s25_s9 }
  0x13   :  { %p307_p5 = scmp.ne.s32.totalorder %s25_s9, %s306_s12  ;;  %p312_p7 = scmp.lt.s32.totalorder %s306_s12, %s306_s12 }
  0x15   :  { %p313_p8 = por %p312_p7, %p311_p6 }
  0x17   :  { %p314_p9 = pnand %p313_p8, %p307_p5 }
  0x19   :  { %317 = shalt.err (!%p314_p9)
}
  0x1a   :  { %27 = dma.hbm_to_vmem [thread:$0]  %s491_s0, 128, %s25_s9, [#allocation5]  }
  0x1b   :  { %s326_s15 = scalar_lea.vmem %s49_s11, 16  ;;  %s330_s1 = scalar_lea.vmem %s49_s11, 32 }
  0x1c   :  { %p327_p10 = scmp.ne.s32.totalorder %s49_s11, %s326_s15  ;;  %p331_p11 = scmp.lt.s32.totalorder %s49_s11, %s49_s11 }
  0x1d   :  { %p332_p12 = scmp.lt.s32.totalorder %s330_s1, %s326_s15 }
  0x1f   :  { %p333_p13 = por %p332_p12, %p331_p11 }
  0x21   :  { %p334_p0 = pnand %p333_p13, %p327_p10 }
  0x23   :  { %337 = shalt.err (!%p334_p0)
}
  0x24   :  { %51 = dma.hbm_to_vmem [thread:$0]  %s494_s3, 16, %s49_s11, [#allocation8]  }
  0x25   :  { %s413_s18 = smov [#allocation10]  }
  0x26   :  { %s58_s19 = sshll.u32 %s413_s18, 4  ;;  %s59_s19 = int_to_ptr.vmem [resolvable:$true] %s58_s19 }
  0x27   :  { %s346_s20 = scalar_lea.vmem %s59_s19, 128  ;;  %p351_p2 = scmp.lt.s32.totalorder %s59_s19, %s59_s19 }
  0x28   :  { %p347_p1 = scmp.ne.s32.totalorder %s59_s19, %s346_s20  ;;  %p352_p3 = scmp.lt.s32.totalorder %s346_s20, %s346_s20 }
  0x2a   :  { %p353_p4 = por %p352_p3, %p351_p2 }
  0x2c   :  { %p354_p5 = pnand %p353_p4, %p347_p1 }
  0x2e   :  { %357 = shalt.err (!%p354_p5)
}
  0x2f   :  { %61 = dma.hbm_to_vmem [thread:$0]  %s495_s4, 128, %s59_s19, [#allocation11]  }
  0x30   :  { %398 = dma.done.wait [#allocation5], 128  }
  0x31   :  { %399 = vsyncadd [#allocation5], 4294967168 }
  0x32   :  { %400 = dma.done.wait [#allocation8], 528  }
  0x33   :  { %401 = vsyncadd [#allocation8], 4294966768 }
  0x34   :  { %402 = dma.done.wait [#allocation11], 128  }
  0x35   :  { %403 = vsyncadd [#allocation11], 4294967168  ;;  %v414_v0 = vmov 0.0   ;;  %vm415_vm0 = vmmov 0   ;;  %vm81_vm1 = vcmask 261120   ;;  %v91_v1 = vld [vmem:[#allocation7 + $0x18] sm:$0xff] }
  0x36   :  { %251 = vmatprep.subr.mxu0 %v414_v0  ;;  %259 = vmatprep.mubr.msk.f32.mxu0 %vm415_vm0, %v414_v0  ;;  %v90_v2 = vld [vmem:[#allocation7 + $0x10] sm:$0xff]  ;;  %v80_v3 = vld [vmem:[#allocation10] sm:$0xff]  ;;  %v87_v8 = vld [vmem:[#allocation4] sm:$0xff]  ;;  %s416_s24 = smov 96  }
  0x37   :  { %252 = vmatpush3.msra.mxu0 %v91_v1  ;;  %v89_v4 = vld [vmem:[#allocation7 + $0x8] sm:$0xff]  ;;  %82 = vst.msk [vmem:[#allocation2] sm:$0xff] %vm81_vm1, %v80_v3  ;;  %v88_v5 = vld [vmem:[#allocation7] sm:$0xff] }
  0x38   :  { %253 = vmatprep.subr.mxu0 %v414_v0  ;;  %v83_v7 = vld [vmem:[%s496_s5] sm:$0xff]  ;;  %v245_v14 = vld [vmem:[#allocation9] ss:$0 sm:$0xff] }
  0x39   :  { %254 = vmatpush3.msra.mxu0 %v90_v2  ;;  %84 = vst.msk [vmem:[#allocation3] sm:$0xff] %vm81_vm1, %v83_v7  ;;  %v244_v12 = vld [vmem:[%s493_s2] ss:$0 sm:$0xff]  ;;  %s417_s2 = smov [#allocation13]  }
  0x3a   :  { %255 = vmatprep.subr.mxu0 %v414_v0  ;;  %s228_s5 = sshll.u32 %s417_s2, 4  ;;  %s229_s5 = int_to_ptr.vmem [resolvable:$true] %s228_s5 }
  0x3b   :  { %256 = vmatpush3.msra.mxu0 %v89_v4  ;;  %s358_s25 = scalar_lea.vmem %s229_s5, 128  ;;  %p363_p7 = scmp.lt.s32.totalorder %s229_s5, %s229_s5 }
  0x3c   :  { %257 = vmatprep.subr.mxu0 %v414_v0  ;;  %p359_p6 = scmp.ne.s32.totalorder %s229_s5, %s358_s25  ;;  %p364_p8 = scmp.lt.s32.totalorder %s358_s25, %s358_s25 }
  0x3d   :  { %258 = vmatpush3.msra.mxu0 %v88_v5 }
  0x3e   :  { %v85_v6 = vld [vmem:[#allocation2] sm:$0xff]  ;;  %p365_p9 = por %p364_p8, %p363_p7 }
  0x3f   :  { %260 = vmatmul.mubr.msk.f32.vlgmr.msra.gmra.mxu0 %vm81_vm1, %v85_v6 }
  0x40   :  { %v86_v19 = vld [vmem:[#allocation3] sm:$0xff]  ;;  %p366_p10 = pnand %p365_p9, %p359_p6 }
  0xff   :  { %v162_v9 = vpop.f32.mrf.mxu0 }
 0x100   :  { %v166_v10 = vadd.f32 %v162_v9, %v87_v8 }
 0x101   :  { %v261_v11 = vpop.f32.mrf.mxu0 }
 0x102   :  { %274 = vtanh.f32 %v166_v10 }
 0x10f   :  { %v275_v13 = vpop.eup %274 }
 0x110   :  { %v175_v15 = vmul.f32 %v275_v13, %v244_v12 }
 0x112   :  { %v183_v16 = vadd.f32 %v245_v14, %v175_v15 }
 0x114   :  { %186 = vrot.lane.b32.xlu0 %v183_v16, %s416_s24  ;;  %v184_v20 = vmul.f32 %v183_v16, %v86_v19 }
 0x186   :  { %v187_v17 = vpop.permute.xlu0 %186 }
 0x187   :  { %v189_v18 = vmul.f32 %v187_v17, %v183_v16 }
 0x189   :  { %191 = vrot.lane.b32.xlu0 %v189_v18, %s416_s24 }
 0x1fb   :  { %v192_v21 = vpop.permute.xlu0 %191 }
 0x1fc   :  { %v194_v22 = vadd.f32 %v192_v21, %v184_v20 }
 0x1fe   :  { %276 = vtanh.f32 %v194_v22  ;;  %206 = vst.msk [vmem:[#allocation3] sm:$0xff] %vm81_vm1, %v194_v22  ;;  %211 = vst.msk [vmem:[#allocation13] sm:$0xff] %vm81_vm1, %v194_v22 }
 0x20b   :  { %v277_v23 = vpop.eup %276 }
 0x20c   :  { %197 = vrot.lane.b32.xlu1 %v277_v23, %s416_s24 }
 0x20d   :  { %369 = shalt.err (!%p366_p10)
}
 0x20e   :  { %231 = dma.vmem_to_hbm [thread:$0]  %s229_s5, 128, %s498_s7, [#allocation14]  }
 0x20f   :  { %s418_s28 = smov 32   ;;  %s419_s29 = smov [#allocation12]  }
 0x210   :  { %s218_s30 = sshll.u32 %s419_s29, 4  ;;  %s219_s30 = int_to_ptr.vmem [resolvable:$true] %s218_s30 }
 0x211   :  { %s378_s8 = scalar_lea.vmem %s219_s30, 128  ;;  %p383_p12 = scmp.lt.s32.totalorder %s219_s30, %s219_s30 }
 0x212   :  { %p379_p11 = scmp.ne.s32.totalorder %s219_s30, %s378_s8  ;;  %p384_p13 = scmp.lt.s32.totalorder %s378_s8, %s378_s8 }
 0x214   :  { %p385_p0 = por %p384_p13, %p383_p12 }
 0x216   :  { %p386_p1 = pnand %p385_p0, %p379_p11 }
 0x27e   :  { %v198_v24 = vpop.permute.xlu1 %197 }
 0x27f   :  { %v200_v25 = vmul.f32 %v198_v24, %v183_v16 }
 0x281   :  { %202 = vrot.lane.b32.xlu1 %v200_v25, %s418_s28 }
 0x2f3   :  { %v203_v26 = vpop.permute.xlu1 %202 }
 0x2f4   :  { %205 = vst.msk [vmem:[#allocation2] sm:$0xff] %vm81_vm1, %v203_v26  ;;  %207 = vst.msk [vmem:[#allocation12] sm:$0xff] %vm81_vm1, %v203_v26 }
 0x2f5   :  { %389 = shalt.err (!%p386_p1)
}
 0x2f6   :  { %221 = dma.vmem_to_hbm [thread:$0]  %s219_s30, 128, %s497_s6, [#allocation6]  }
 0x2f7   :  { %404 = dma.done.wait [#allocation6], 128  }
 0x2f8   :  { %405 = vsyncadd [#allocation6], 4294967168 }
 0x2f9   :  { %406 = dma.done.wait [#allocation14], 128  }
 0x2fa   :  { %407 = vsyncadd [#allocation14], 4294967168 }
 0x2fb   :  { %238 = vsyncpa [#allocation5], 1 }
 0x2fc   :  { %239 = vsyncpa [#allocation8], 1 }
 0x2fd   :  { %240 = vsyncpa [#allocation11], 1 }
 0x2fe   :  { %241 = vsyncpa [#allocation6], 1 }
 0x2ff   :  { %242 = vsyncpa [#allocation14], 1 }

</bundles_post_ra>
